<compile_context>
chip_gen: v6e
topology: v6e:2x2x1
jax: 0.10.0
libtpu: 0.0.40
codegen_flags: <defaults>
</compile_context>

<pallas_src>
import functools

import jax
import jax.numpy as jnp
from jax import lax
from jax.experimental import pallas as pl
from jax.experimental.pallas import tpu as pltpu


_PAD = 1                  # conv padding
_LRELU_SLOPE = 0.2
_DEFAULT_VMEM = 64 * 1024 * 1024
_VMEM_CAP_CACHE = [None]


def _round_up(x, m):
    return ((x + m - 1) // m) * m


def _vmem_capacity_bytes():
    """Generation-aware VMEM capacity (128 MiB v5e/v6e, 64 MiB v7x), with fallback."""
    if _VMEM_CAP_CACHE[0] is None:
        cap = _DEFAULT_VMEM
        try:
            info = pltpu.get_tpu_info()
            cap = int(getattr(info, "vmem_capacity_bytes", cap)) or cap
        except Exception:
            pass
        _VMEM_CAP_CACHE[0] = cap
    return _VMEM_CAP_CACHE[0]


def _vmem_limit_bytes():
    return min(int(_vmem_capacity_bytes() * 3 // 4), 112 * 1024 * 1024)


def _choose_tn(n_batch, m_rows, r_rows, cs_pad, coutp, out_bytes):
    """Largest 128-multiple channel tile that fits the VMEM budget; >=2 grid blocks."""
    budget = _vmem_capacity_bytes() // 2
    fixed = 2 * r_rows * cs_pad * 2                       # bf16 x block, double-buffered
    candidates = [coutp // d for d in (1, 2, 4, 8, 16, 32)
                  if coutp % d == 0 and (coutp // d) % 128 == 0]
    # v7x megacore: ensure >=2 parallel grid blocks when batch alone does not provide it.
    if n_batch < 2 and len(candidates) > 1:
        candidates = candidates[1:]
    tn = candidates[-1]
    for cand in candidates:
        per_tn = (2 * 4 * cs_pad * cand * 2               # bf16 weight block, double-buffered
                  + 2 * m_rows * cand * out_bytes         # output block, double-buffered
                  + 3 * m_rows * cand * 4)                # f32 matmul temporaries headroom
        if fixed + per_tn <= budget:
            tn = cand
            break
    return tn


# ----------------------------------------------------------------------------
# Pallas kernel: 4x shifted 1x1 conv (space-to-depth form) + folded-BN shift
#                + LeakyReLU(0.2), bf16 MXU operands with f32 accumulation.
# ----------------------------------------------------------------------------
def _conv_s2d_kernel(x_ref, w_ref, shift_ref, o_ref, *, wop, m_rows):
    # x_ref     : (r_rows, cs)  bf16  flattened padded space-to-depth input (one image)
    # w_ref     : (4, cs, tn)   bf16  weights per (dh*2+dw) shift, BN scale folded
    # shift_ref : (1, tn)       f32   folded BN shift (0 for the first block)
    # o_ref     : (m_rows, tn)        bf16 (intermediate) or f32 (last block)
    acc = None
    for dd in range(4):
        off = (dd // 2) * wop + (dd % 2)                  # static shift: dh*wop + dw
        xs = x_ref[pl.ds(off, m_rows), :]
        part = jnp.dot(xs, w_ref[dd], preferred_element_type=jnp.float32)
        acc = part if acc is None else acc + part
    y = acc + shift_ref[...]
    y = jnp.maximum(y, _LRELU_SLOPE * y)                  # LeakyReLU(0.2)
    o_ref[...] = y.astype(o_ref.dtype)


# ----------------------------------------------------------------------------
# Wrapper glue: space-to-depth packing, weight rearrangement, tiling.
# ----------------------------------------------------------------------------
def conv_bn_lrelu(x_nhwc, w_oihw, scale, shift, *, out_dtype):
    """One encoder block: Conv2d(k=4,s=2,p=1,bias=False) [+ folded BN] + LeakyReLU(0.2)."""
    n, h, w, cin = x_nhwc.shape
    cout = w_oihw.shape[0]
    assert h % 2 == 0 and w % 2 == 0, "spatial dims must be even for k=4,s=2,p=1"
    ho, wo = h // 2, w // 2
    hop, wop = ho + 1, wo + 1

    # --- space-to-depth(2) of the zero-padded bf16 input (one fused XLA pass).
    cs = 4 * cin
    cs_pad = _round_up(cs, 8)
    x_bf = x_nhwc.astype(jnp.bfloat16)
    xp = jnp.pad(x_bf, ((0, 0), (_PAD, _PAD), (_PAD, _PAD), (0, 0)))
    xs2d = jnp.transpose(xp.reshape(n, hop, 2, wop, 2, cin), (0, 1, 3, 2, 4, 5))
    x_flat = xs2d.reshape(n, hop * wop, cs)
    m_rows = ho * wop                      # one garbage column per output row (sliced off)
    r_rows = _round_up(hop * wop + 1, 8)   # +1 keeps the (dh=1,dw=1) shifted read in-bounds
    x_flat = jnp.pad(x_flat, ((0, 0), (0, r_rows - hop * wop), (0, cs_pad - cs)))

    # --- BN-scale-folded weights rearranged to (dh*2+dw, s2d-channel, cout), 128-pad cout.
    coutp = _round_up(cout, 128)
    w_k = jnp.transpose(w_oihw * scale[:, None, None, None], (2, 3, 1, 0))   # (KH,KW,Cin,Co)
    w_k = jnp.transpose(w_k.reshape(2, 2, 2, 2, cin, cout), (0, 2, 1, 3, 4, 5))
    w2 = w_k.reshape(4, cs, cout)
    w2 = jnp.pad(w2, ((0, 0), (0, cs_pad - cs), (0, coutp - cout))).astype(jnp.bfloat16)
    shift_p = jnp.pad(shift, (0, coutp - cout)).reshape(1, coutp).astype(jnp.float32)

    out_bytes = jnp.dtype(out_dtype).itemsize
    tn = _choose_tn(n, m_rows, r_rows, cs_pad, coutp, out_bytes)
    grid = (n, coutp // tn)

    kernel = functools.partial(_conv_s2d_kernel, wop=wop, m_rows=m_rows)
    out = pl.pallas_call(
        kernel,
        out_shape=jax.ShapeDtypeStruct((n, m_rows, coutp), out_dtype),
        grid=grid,
        in_specs=[
            pl.BlockSpec((None, r_rows, cs_pad), lambda b, j: (b, 0, 0)),
            pl.BlockSpec((4, cs_pad, tn), lambda b, j: (0, 0, j)),
            pl.BlockSpec((1, tn), lambda b, j: (0, j)),
        ],
        out_specs=pl.BlockSpec((None, m_rows, tn), lambda b, j: (b, 0, j)),
        compiler_params=pltpu.CompilerParams(
            dimension_semantics=("parallel", "parallel"),
            vmem_limit_bytes=_vmem_limit_bytes()),
    )(x_flat, w2, shift_p)

    # Drop the per-row garbage column and the channel padding (fuses with the next
    # block's space-to-depth pass / the final transpose).
    return out.reshape(n, ho, wop, coutp)[:, :, :wo, :cout]


@jax.jit
def encoder_forward(x_nchw, params):
    """EncoderCNN_2 forward. x: (N, Cin, H, W) f32 -> (N, conv_dims[-1], H/2^L, W/2^L) f32."""
    out = jnp.transpose(x_nchw, (0, 2, 3, 1))              # NCHW -> NHWC (internal layout)
    blocks = params["conv_blocks"]
    for idx, (w, scale, shift) in enumerate(blocks):
        last = idx == len(blocks) - 1
        out = conv_bn_lrelu(out, w, scale, shift,
                            out_dtype=jnp.float32 if last else jnp.bfloat16)
    return jnp.transpose(out, (0, 3, 1, 2))                # back to NCHW (PyTorch layout)


# ----------------------------------------------------------------------------
# Pure-JAX reference mirroring the kernel numerics (bf16 operands / activations,
# f32 accumulation, f32 final output).
# ----------------------------------------------------------------------------
def reference_forward(x_nchw, params):
    out = x_nchw
    blocks = params["conv_blocks"]
    for idx, (w, scale, shift) in enumerate(blocks):
        w_s = (w * scale[:, None, None, None]).astype(jnp.bfloat16)
        y = lax.conv_general_dilated(
            out.astype(jnp.bfloat16), w_s, (2, 2), [(1, 1), (1, 1)],
            dimension_numbers=("NCHW", "OIHW", "NCHW"),
            preferred_element_type=jnp.float32)
        y = y + shift[None, :, None, None]
        y = jnp.maximum(y, _LRELU_SLOPE * y)
        out = y if idx == len(blocks) - 1 else y.astype(jnp.bfloat16)
    return out


# ----------------------------------------------------------------------------
# Deterministic parameter construction (matches nn.Module shapes).
# ----------------------------------------------------------------------------
def make_params(key, input_channel, conv_dims):
    eps = 1e-5
    keys = jax.random.split(key, len(conv_dims))
    conv_blocks = []
    prev = input_channel
    for idx, out_dim in enumerate(conv_dims):
        w = 0.05 * jax.random.normal(keys[idx], (out_dim, prev, 4, 4), jnp.float32)
        if idx == 0:
            # first block: Conv + LeakyReLU only -> identity affine
            scale = jnp.ones((out_dim,), jnp.float32)
            shift = jnp.zeros((out_dim,), jnp.float32)
        else:
            # eval-mode BN with default running stats (mean=0, var=1, gamma=1, beta=0)
            gamma = jnp.ones((out_dim,), jnp.float32)
            beta = jnp.zeros((out_dim,), jnp.float32)
            running_mean = jnp.zeros((out_dim,), jnp.float32)
            running_var = jnp.ones((out_dim,), jnp.float32)
            scale = gamma / jnp.sqrt(running_var + eps)
            shift = beta - running_mean * scale
        conv_blocks.append((w, scale, shift))
        prev = out_dim
    return {"conv_blocks": conv_blocks}


if __name__ == "__main__":
    key = jax.random.PRNGKey(0)
    k_x, k_p = jax.random.split(key)

    # Small shapes consistent with the module's forward:
    #   input_channel=4, conv_dims=[8, 16], batch=2, 16x16 spatial.
    N, CIN, H, W = 2, 4, 16, 16
    CONV_DIMS = [8, 16]

    x = jax.random.normal(k_x, (N, CIN, H, W), jnp.float32)
    params = make_params(k_p, CIN, CONV_DIMS)

    y = encoder_forward(x, params)
    y = jax.block_until_ready(y)

    y_ref = jax.block_until_ready(reference_forward(x, params))
    assert y.shape == (N, CONV_DIMS[-1], H // 4, W // 4), y.shape
    assert y.dtype == jnp.float32, y.dtype
    assert jnp.allclose(y, y_ref, atol=1e-2, rtol=1e-2), (
        float(jnp.max(jnp.abs(y - y_ref))))

    print("KERNEL_OK")
</pallas_src>

<mosaic_0001>
module attributes {stable_mosaic.version = 11 : i64} {
  func.func @_conv_s2d_kernel(%arg0: i32, %arg1: i32, %arg2: memref<1x88x16xbf16, #tpu.memory_space<vmem>>, %arg3: memref<4x16x128xbf16, #tpu.memory_space<vmem>>, %arg4: memref<1x128xf32, #tpu.memory_space<vmem>>, %arg5: memref<1x72x128xbf16, #tpu.memory_space<vmem>>) attributes {dimension_semantics = [#tpu.dimension_semantics<parallel>, #tpu.dimension_semantics<parallel>], iteration_bounds = array<i64: 2, 1>, scalar_prefetch = 0 : i64, scratch_operands = 0 : i64, tpu.core_type = #tpu.core_type<tc>, window_params = [{transform_indices = @transform_0, window_bounds = array<i64: 1, 88, 16>}, {transform_indices = @transform_1, window_bounds = array<i64: 4, 16, 128>}, {transform_indices = @transform_2, window_bounds = array<i64: 1, 128>}, {transform_indices = @transform_3, window_bounds = array<i64: 1, 72, 128>}]} {
    %c0 = arith.constant 0 : index
    %c0_0 = arith.constant 0 : index
    %c0_1 = arith.constant 0 : index
    %0 = vector.load %arg2[%c0, %c0_0, %c0_1] : memref<1x88x16xbf16, #tpu.memory_space<vmem>>, vector<1x72x16xbf16>
    %1 = vector.shape_cast %0 : vector<1x72x16xbf16> to vector<72x16xbf16>
    %c0_2 = arith.constant 0 : index
    %c0_3 = arith.constant 0 : index
    %c0_4 = arith.constant 0 : index
    %2 = vector.load %arg3[%c0_2, %c0_3, %c0_4] : memref<4x16x128xbf16, #tpu.memory_space<vmem>>, vector<1x16x128xbf16>
    %3 = vector.shape_cast %2 : vector<1x16x128xbf16> to vector<16x128xbf16>
    %cst = arith.constant dense<0.000000e+00> : vector<72x128xf32>
    %4 = tpu.matmul %1, %3, %cst {dimension_numbers = #tpu.dot_dimension_numbers<[1], [0], [0], [1], [0, 0, 1, 1], [], []>} : vector<72x16xbf16>, vector<16x128xbf16>, vector<72x128xf32> -> vector<72x128xf32>
    %c0_5 = arith.constant 0 : index
    %c1 = arith.constant 1 : index
    %c0_6 = arith.constant 0 : index
    %5 = vector.load %arg2[%c0_5, %c1, %c0_6] : memref<1x88x16xbf16, #tpu.memory_space<vmem>>, vector<1x72x16xbf16>
    %6 = vector.shape_cast %5 : vector<1x72x16xbf16> to vector<72x16xbf16>
    %c1_7 = arith.constant 1 : index
    %c0_8 = arith.constant 0 : index
    %c0_9 = arith.constant 0 : index
    %7 = vector.load %arg3[%c1_7, %c0_8, %c0_9] : memref<4x16x128xbf16, #tpu.memory_space<vmem>>, vector<1x16x128xbf16>
    %8 = vector.shape_cast %7 : vector<1x16x128xbf16> to vector<16x128xbf16>
    %cst_10 = arith.constant dense<0.000000e+00> : vector<72x128xf32>
    %9 = tpu.matmul %6, %8, %cst_10 {dimension_numbers = #tpu.dot_dimension_numbers<[1], [0], [0], [1], [0, 0, 1, 1], [], []>} : vector<72x16xbf16>, vector<16x128xbf16>, vector<72x128xf32> -> vector<72x128xf32>
    %10 = arith.addf %4, %9 : vector<72x128xf32>
    %c0_11 = arith.constant 0 : index
    %c9 = arith.constant 9 : index
    %c0_12 = arith.constant 0 : index
    %11 = vector.load %arg2[%c0_11, %c9, %c0_12] : memref<1x88x16xbf16, #tpu.memory_space<vmem>>, vector<1x72x16xbf16>
    %12 = vector.shape_cast %11 : vector<1x72x16xbf16> to vector<72x16xbf16>
    %c2 = arith.constant 2 : index
    %c0_13 = arith.constant 0 : index
    %c0_14 = arith.constant 0 : index
    %13 = vector.load %arg3[%c2, %c0_13, %c0_14] : memref<4x16x128xbf16, #tpu.memory_space<vmem>>, vector<1x16x128xbf16>
    %14 = vector.shape_cast %13 : vector<1x16x128xbf16> to vector<16x128xbf16>
    %cst_15 = arith.constant dense<0.000000e+00> : vector<72x128xf32>
    %15 = tpu.matmul %12, %14, %cst_15 {dimension_numbers = #tpu.dot_dimension_numbers<[1], [0], [0], [1], [0, 0, 1, 1], [], []>} : vector<72x16xbf16>, vector<16x128xbf16>, vector<72x128xf32> -> vector<72x128xf32>
    %16 = arith.addf %10, %15 : vector<72x128xf32>
    %c0_16 = arith.constant 0 : index
    %c10 = arith.constant 10 : index
    %c0_17 = arith.constant 0 : index
    %17 = vector.load %arg2[%c0_16, %c10, %c0_17] : memref<1x88x16xbf16, #tpu.memory_space<vmem>>, vector<1x72x16xbf16>
    %18 = vector.shape_cast %17 : vector<1x72x16xbf16> to vector<72x16xbf16>
    %c3 = arith.constant 3 : index
    %c0_18 = arith.constant 0 : index
    %c0_19 = arith.constant 0 : index
    %19 = vector.load %arg3[%c3, %c0_18, %c0_19] : memref<4x16x128xbf16, #tpu.memory_space<vmem>>, vector<1x16x128xbf16>
    %20 = vector.shape_cast %19 : vector<1x16x128xbf16> to vector<16x128xbf16>
    %cst_20 = arith.constant dense<0.000000e+00> : vector<72x128xf32>
    %21 = tpu.matmul %18, %20, %cst_20 {dimension_numbers = #tpu.dot_dimension_numbers<[1], [0], [0], [1], [0, 0, 1, 1], [], []>} : vector<72x16xbf16>, vector<16x128xbf16>, vector<72x128xf32> -> vector<72x128xf32>
    %22 = arith.addf %16, %21 : vector<72x128xf32>
    %c0_21 = arith.constant 0 : index
    %c0_22 = arith.constant 0 : index
    %23 = vector.load %arg4[%c0_21, %c0_22] : memref<1x128xf32, #tpu.memory_space<vmem>>, vector<1x128xf32>
    %24 = vector.broadcast %23 : vector<1x128xf32> to vector<72x128xf32>
    %25 = arith.addf %22, %24 : vector<72x128xf32>
    %cst_23 = arith.constant 2.000000e-01 : f32
    %26 = vector.broadcast %cst_23 : f32 to vector<72x128xf32>
    %27 = arith.mulf %26, %25 : vector<72x128xf32>
    %28 = arith.maximumf %25, %27 : vector<72x128xf32>
    %29 = arith.truncf %28 : vector<72x128xf32> to vector<72x128xbf16>
    %c0_24 = arith.constant 0 : index
    %c0_25 = arith.constant 0 : index
    %c0_26 = arith.constant 0 : index
    %30 = vector.load %arg5[%c0_24, %c0_25, %c0_26] : memref<1x72x128xbf16, #tpu.memory_space<vmem>>, vector<1x72x128xbf16>
    %31 = vector.shape_cast %30 : vector<1x72x128xbf16> to vector<72x128xbf16>
    %32 = vector.shape_cast %29 : vector<72x128xbf16> to vector<1x72x128xbf16>
    tpu.vector_store %arg5[%c0_24, %c0_25, %c0_26], %32 {strides = array<i32>} : memref<1x72x128xbf16, #tpu.memory_space<vmem>>, vector<1x72x128xbf16>,
    return
  }
  func.func @transform_0(%arg0: i32, %arg1: i32) -> (i32, i32, i32) {
    %c0_i32 = arith.constant 0 : i32
    %c0_i32_0 = arith.constant 0 : i32
    %c0_i32_1 = arith.constant 0 : i32
    return %arg0, %c0_i32, %c0_i32_0 : i32, i32, i32
  }
  func.func @transform_1(%arg0: i32, %arg1: i32) -> (i32, i32, i32) {
    %c0_i32 = arith.constant 0 : i32
    %c0_i32_0 = arith.constant 0 : i32
    %c0_i32_1 = arith.constant 0 : i32
    return %c0_i32, %c0_i32_0, %arg1 : i32, i32, i32
  }
  func.func @transform_2(%arg0: i32, %arg1: i32) -> (i32, i32) {
    %c0_i32 = arith.constant 0 : i32
    %c0_i32_0 = arith.constant 0 : i32
    return %c0_i32, %arg1 : i32, i32
  }
  func.func @transform_3(%arg0: i32, %arg1: i32) -> (i32, i32, i32) {
    %c0_i32 = arith.constant 0 : i32
    %c0_i32_0 = arith.constant 0 : i32
    return %arg0, %c0_i32, %arg1 : i32, i32, i32
  }
}

module attributes {stable_mosaic.version = 11 : i64} {
  func.func @_conv_s2d_kernel(%arg0: i32, %arg1: i32, %arg2: memref<1x32x32xbf16, #tpu.memory_space<vmem>>, %arg3: memref<4x32x128xbf16, #tpu.memory_space<vmem>>, %arg4: memref<1x128xf32, #tpu.memory_space<vmem>>, %arg5: memref<1x20x128xf32, #tpu.memory_space<vmem>>) attributes {dimension_semantics = [#tpu.dimension_semantics<parallel>, #tpu.dimension_semantics<parallel>], iteration_bounds = array<i64: 2, 1>, scalar_prefetch = 0 : i64, scratch_operands = 0 : i64, tpu.core_type = #tpu.core_type<tc>, window_params = [{transform_indices = @transform_0, window_bounds = array<i64: 1, 32, 32>}, {transform_indices = @transform_1, window_bounds = array<i64: 4, 32, 128>}, {transform_indices = @transform_2, window_bounds = array<i64: 1, 128>}, {transform_indices = @transform_3, window_bounds = array<i64: 1, 20, 128>}]} {
    %c0 = arith.constant 0 : index
    %c0_0 = arith.constant 0 : index
    %c0_1 = arith.constant 0 : index
    %0 = vector.load %arg2[%c0, %c0_0, %c0_1] : memref<1x32x32xbf16, #tpu.memory_space<vmem>>, vector<1x20x32xbf16>
    %1 = vector.shape_cast %0 : vector<1x20x32xbf16> to vector<20x32xbf16>
    %c0_2 = arith.constant 0 : index
    %c0_3 = arith.constant 0 : index
    %c0_4 = arith.constant 0 : index
    %2 = vector.load %arg3[%c0_2, %c0_3, %c0_4] : memref<4x32x128xbf16, #tpu.memory_space<vmem>>, vector<1x32x128xbf16>
    %3 = vector.shape_cast %2 : vector<1x32x128xbf16> to vector<32x128xbf16>
    %cst = arith.constant dense<0.000000e+00> : vector<20x128xf32>
    %4 = tpu.matmul %1, %3, %cst {dimension_numbers = #tpu.dot_dimension_numbers<[1], [0], [0], [1], [0, 0, 1, 1], [], []>} : vector<20x32xbf16>, vector<32x128xbf16>, vector<20x128xf32> -> vector<20x128xf32>
    %c0_5 = arith.constant 0 : index
    %c1 = arith.constant 1 : index
    %c0_6 = arith.constant 0 : index
    %5 = vector.load %arg2[%c0_5, %c1, %c0_6] : memref<1x32x32xbf16, #tpu.memory_space<vmem>>, vector<1x20x32xbf16>
    %6 = vector.shape_cast %5 : vector<1x20x32xbf16> to vector<20x32xbf16>
    %c1_7 = arith.constant 1 : index
    %c0_8 = arith.constant 0 : index
    %c0_9 = arith.constant 0 : index
    %7 = vector.load %arg3[%c1_7, %c0_8, %c0_9] : memref<4x32x128xbf16, #tpu.memory_space<vmem>>, vector<1x32x128xbf16>
    %8 = vector.shape_cast %7 : vector<1x32x128xbf16> to vector<32x128xbf16>
    %cst_10 = arith.constant dense<0.000000e+00> : vector<20x128xf32>
    %9 = tpu.matmul %6, %8, %cst_10 {dimension_numbers = #tpu.dot_dimension_numbers<[1], [0], [0], [1], [0, 0, 1, 1], [], []>} : vector<20x32xbf16>, vector<32x128xbf16>, vector<20x128xf32> -> vector<20x128xf32>
    %10 = arith.addf %4, %9 : vector<20x128xf32>
    %c0_11 = arith.constant 0 : index
    %c5 = arith.constant 5 : index
    %c0_12 = arith.constant 0 : index
    %11 = vector.load %arg2[%c0_11, %c5, %c0_12] : memref<1x32x32xbf16, #tpu.memory_space<vmem>>, vector<1x20x32xbf16>
    %12 = vector.shape_cast %11 : vector<1x20x32xbf16> to vector<20x32xbf16>
    %c2 = arith.constant 2 : index
    %c0_13 = arith.constant 0 : index
    %c0_14 = arith.constant 0 : index
    %13 = vector.load %arg3[%c2, %c0_13, %c0_14] : memref<4x32x128xbf16, #tpu.memory_space<vmem>>, vector<1x32x128xbf16>
    %14 = vector.shape_cast %13 : vector<1x32x128xbf16> to vector<32x128xbf16>
    %cst_15 = arith.constant dense<0.000000e+00> : vector<20x128xf32>
    %15 = tpu.matmul %12, %14, %cst_15 {dimension_numbers = #tpu.dot_dimension_numbers<[1], [0], [0], [1], [0, 0, 1, 1], [], []>} : vector<20x32xbf16>, vector<32x128xbf16>, vector<20x128xf32> -> vector<20x128xf32>
    %16 = arith.addf %10, %15 : vector<20x128xf32>
    %c0_16 = arith.constant 0 : index
    %c6 = arith.constant 6 : index
    %c0_17 = arith.constant 0 : index
    %17 = vector.load %arg2[%c0_16, %c6, %c0_17] : memref<1x32x32xbf16, #tpu.memory_space<vmem>>, vector<1x20x32xbf16>
    %18 = vector.shape_cast %17 : vector<1x20x32xbf16> to vector<20x32xbf16>
    %c3 = arith.constant 3 : index
    %c0_18 = arith.constant 0 : index
    %c0_19 = arith.constant 0 : index
    %19 = vector.load %arg3[%c3, %c0_18, %c0_19] : memref<4x32x128xbf16, #tpu.memory_space<vmem>>, vector<1x32x128xbf16>
    %20 = vector.shape_cast %19 : vector<1x32x128xbf16> to vector<32x128xbf16>
    %cst_20 = arith.constant dense<0.000000e+00> : vector<20x128xf32>
    %21 = tpu.matmul %18, %20, %cst_20 {dimension_numbers = #tpu.dot_dimension_numbers<[1], [0], [0], [1], [0, 0, 1, 1], [], []>} : vector<20x32xbf16>, vector<32x128xbf16>, vector<20x128xf32> -> vector<20x128xf32>
    %22 = arith.addf %16, %21 : vector<20x128xf32>
    %c0_21 = arith.constant 0 : index
    %c0_22 = arith.constant 0 : index
    %23 = vector.load %arg4[%c0_21, %c0_22] : memref<1x128xf32, #tpu.memory_space<vmem>>, vector<1x128xf32>
    %24 = vector.broadcast %23 : vector<1x128xf32> to vector<20x128xf32>
    %25 = arith.addf %22, %24 : vector<20x128xf32>
    %cst_23 = arith.constant 2.000000e-01 : f32
    %26 = vector.broadcast %cst_23 : f32 to vector<20x128xf32>
    %27 = arith.mulf %26, %25 : vector<20x128xf32>
    %28 = arith.maximumf %25, %27 : vector<20x128xf32>
    %c0_24 = arith.constant 0 : index
    %c0_25 = arith.constant 0 : index
    %c0_26 = arith.constant 0 : index
    %29 = vector.load %arg5[%c0_24, %c0_25, %c0_26] : memref<1x20x128xf32, #tpu.memory_space<vmem>>, vector<1x20x128xf32>
    %30 = vector.shape_cast %29 : vector<1x20x128xf32> to vector<20x128xf32>
    %31 = vector.shape_cast %28 : vector<20x128xf32> to vector<1x20x128xf32>
    tpu.vector_store %arg5[%c0_24, %c0_25, %c0_26], %31 {strides = array<i32>} : memref<1x20x128xf32, #tpu.memory_space<vmem>>, vector<1x20x128xf32>,
    return
  }
  func.func @transform_0(%arg0: i32, %arg1: i32) -> (i32, i32, i32) {
    %c0_i32 = arith.constant 0 : i32
    %c0_i32_0 = arith.constant 0 : i32
    %c0_i32_1 = arith.constant 0 : i32
    return %arg0, %c0_i32, %c0_i32_0 : i32, i32, i32
  }
  func.func @transform_1(%arg0: i32, %arg1: i32) -> (i32, i32, i32) {
    %c0_i32 = arith.constant 0 : i32
    %c0_i32_0 = arith.constant 0 : i32
    %c0_i32_1 = arith.constant 0 : i32
    return %c0_i32, %c0_i32_0, %arg1 : i32, i32, i32
  }
  func.func @transform_2(%arg0: i32, %arg1: i32) -> (i32, i32) {
    %c0_i32 = arith.constant 0 : i32
    %c0_i32_0 = arith.constant 0 : i32
    return %c0_i32, %arg1 : i32, i32
  }
  func.func @transform_3(%arg0: i32, %arg1: i32) -> (i32, i32, i32) {
    %c0_i32 = arith.constant 0 : i32
    %c0_i32_0 = arith.constant 0 : i32
    return %arg0, %c0_i32, %arg1 : i32, i32, i32
  }
}

</mosaic_0001>

<bundles_post_ra>
// kernel: encoder_forward.2
= control target key start
LH: loop header
LB: loop body
LE: loop exit
PB: predicated region body
PF: predicated region fallthrough
CT: control target
= control target key end

     0   :  { %s1267_s12 = smov 0   ;;  %s1269_s13 = smov 0   ;;  %s1455_s0 = inlined_call_operand.vmem [shape: bf16[2,88,16], index: 0, kind: input, shape index: {}]   ;;  %s1456_s1 = inlined_call_operand.vmem [shape: bf16[4,16,128], index: 1, kind: input, shape index: {}]   ;;  %s1457_s2 = inlined_call_operand.vmem [shape: f32[1,128], index: 2, kind: input, shape index: {}]   ;;  %s1458_s3 = inlined_call_operand.vmem [shape: bf16[2,72,128], index: 3, kind: output, shape index: {}]  }
   0x1   :  { %s1271_s14 = smov 0  }
   0x2 LB: > { %s25_s15 = sadd.s32 1, %s1239_s13  ;;  %p976_p0 = scmp.ge.s32.totalorder %s1243_s14, 1  ;;  %s1243_s14 = sphi %s1271_s14, %s13_s14   ;;  %s1239_s13 = sphi %s1269_s13, %s1460_s13   ;;  %s1235_s12 = sphi %s1267_s12, %s1459_s12  }
   0x3   : > { %p27_p1 = scmp.ge.s32.totalorder %s25_s15, 2  ;;  %p168_p2 = scmp.lt.s32.totalorder %s1243_s14, 3 }
   0x5   : > { %s1462_s15 = smov (%p27_p1, %s25_s15), 0  ;;  %p169_p3 = pnand %p976_p0, %p168_p2 }
   0x6   : > { %p202_p4 = scmp.lt.s32.totalorder (!%p169_p3), %s1235_s12, 1 }
   0x7   : > { %172 = sbr.rel (%p169_p3) target bundleno = 302 (0x12e), region = 32 }
   0xc   : > { %v1205_v0 = vld [vmem:[%s1456_s1] sm:$0xff]   ;;  %v1245_v1 = vmov 0.0   ;;  %v1206_v2 = vld [vmem:[%s1456_s1 + $0x8] sm:$0xff]   ;;  %vm1246_vm0 = vmmov 0   ;;  %s1464_s12 = smov (!%p202_p4, %s1235_s12), 1  ;;  %vm309_vm1 = vcmask 130048  }
   0xd   : > { %1111 = vmatprep.subr.bf16.mxu1 %v1245_v1  ;;  %1089 = vmatprep.subr.bf16.mxu0 %v1245_v1  ;;  %s1177_s20 = smul.u32 44, %s1464_s12  ;;  %v1210_v3 = vld [vmem:[%s1456_s1 + $0x18] sm:$0xff]   ;;  %vm263_vm2 = vsmask.f32 7424  ;;  %v1209_v13 = vld [vmem:[%s1456_s1 + $0x10] sm:$0xff]   ;;  %vm673_vm3 = vcmask 1046528  }
   0xe   : > { %1112 = vmatpush3.bf16.msra.mxu1 %v1205_v0  ;;  %1113 = vmatprep.mubr.msk.bf16.mxu1 %vm1246_vm0, %v1245_v1  ;;  %s1178_s30 = smul.u32 36, %s1464_s12 }
   0xf   : > { %1090 = vmatpush3.bf16.msra.mxu0 %v1206_v2  ;;  %1091 = vmatprep.mubr.msk.bf16.mxu0 %vm1246_vm0, %v1245_v1  ;;  %s1305_s23 = scalar_lea.vmem %s1455_s0, %s1177_s20 }
  0x10   : > { %1133 = vmatprep.subr.bf16.mxu0 %v1245_v1  ;;  %1155 = vmatprep.subr.bf16.mxu1 %v1245_v1  ;;  %v1207_v4 = vld [vmem:[%s1305_s23] sm:$0xff]   ;;  %v1208_v5 = vld [vmem:[%s1305_s23 + $0x8] sm:$0xff]   ;;  %v1211_v9 = vld [vmem:[%s1305_s23 + $0x10] sm:$0xff]   ;;  %s1424_s6 = scalar_lea.vmem %s1458_s3, %s1178_s30 }
  0x11   : > { %1114 = vmatmul.mubr.msk.bf16.vlgmr.msra.gmra.mxu1 %vm309_vm1, %v1207_v4  ;;  %v265_v6 = vshrl.u32 %v1207_v4, 16  ;;  %v267_v7 = vshll.u32 %v1207_v4, 16  ;;  %v272_v8 = vshll.u32 %v1208_v5, 16  ;;  %v276_v14 = vshrl.u32 %v1208_v5, 16  ;;  %v1212_v19 = vld [vmem:[%s1305_s23 + $0x18] sm:$0xff]   ;;  %v1216_v39 = vld [vmem:[%s1305_s23 + $0xc] sm:$0xff]  }
  0x12   : > { %1156 = vmatpush3.bf16.msra.mxu1 %v1210_v3  ;;  %1117 = vmatprep.mubr.msk.bf16.mxu1 %vm1246_vm0, %v1245_v1  ;;  %v280_v15 = vshll.u32 %v1211_v9, 16  ;;  %v284_v21 = vshrl.u32 %v1211_v9, 16  ;;  %v288_v22 = vshll.u32 %v1212_v19, 16  ;;  %v231_v23 = vld [vmem:[%s1305_s23 + $0x20] sm:$0xf]  ;;  %v292_v29 = vshrl.u32 %v1212_v19, 16 }
  0x13   : > { %v269_v10 = vrot.slane %v267_v7, 1  ;;  %v274_v11 = vrot.slane %v272_v8, 1  ;;  %v234_v24 = vld [vmem:[%s1305_s23 + $0x24] sm:$0x1]  ;;  %v488_v34 = vld [vmem:[%s1305_s23 + $0x8] sm:$0xf]  ;;  %v992_v37 = vcombine.low %v231_v23, %v231_v23 }
  0x14   : > { %v282_v18 = vrot.slane %v280_v15, 1  ;;  %v290_v26 = vrot.slane %v288_v22, 1  ;;  %v985_v27 = vcombine.low %v231_v23, %v234_v24  ;;  %v487_v33 = vld [vmem:[%s1305_s23 + $0x4] sm:$0xf]  ;;  %v675_v44 = vrot.slane %v1216_v39, 1  ;;  %v1218_v50 = vld [vmem:[%s1305_s23 + $0x14] sm:$0xff]  }
  0x15   : > { %v270_v12 = vor.u32 %v269_v10, %v265_v6  ;;  %v278_v17 = vor.u32 %v276_v14, %v274_v11  ;;  %v666_v35 = vld [vmem:[%s1305_s23 + $0x4] sm:$0xe]  ;;  %v1001_v38 = vcombine.low %v487_v33, %v488_v34  ;;  %v533_v48 = vshll.u32 %v1216_v39, 16  ;;  %v1219_v58 = vld [vmem:[%s1305_s23 + $0x1c] sm:$0xff]  }
  0x16   : > { %v286_v25 = vor.u32 %v284_v21, %v282_v18  ;;  %v296_v30 = vshll.u32 %v985_v27, 16  ;;  %v294_v31 = vor.u32 %v292_v29, %v290_v26  ;;  %v1014_v40 = vcombine.low %v666_v35, %v488_v34  ;;  %v1220_v3 = vld [vmem:[%s1305_s23 + $0x24] sm:$0x1f]  }
  0x17   : > { %v275_v16 = vsel %vm263_vm2, %v270_v12, %v274_v11  ;;  %v283_v20 = vsel %vm263_vm2, %v278_v17, %v282_v18  ;;  %v300_v41 = vshrl.u32 %v985_v27, 16  ;;  %v528_v42 = vshll.u32 %v1001_v38, 16 }
  0x18   : > { %1092 = vmatmul.mubr.msk.bf16.vlgmr.msra.gmra.mxu0 %vm309_vm1, %v275_v16  ;;  %v291_v28 = vsel %vm263_vm2, %v286_v25, %v290_v26  ;;  %v298_v32 = vrot.slane %v296_v30, 1  ;;  %v674_v43 = vrot.slane %v1014_v40, 1  ;;  %v526_v46 = vshrl.u32 %v1001_v38, 16 }
  0x19   : > { %1134 = vmatpush3.bf16.msra.mxu0 %v1209_v13  ;;  %1118 = vmatmul.mubr.msk.bf16.gmra.mxu1 %vm309_vm1, %v1208_v5  ;;  %v530_v47 = vrot.slane %v528_v42, 1  ;;  %v535_v52 = vrot.slane %v533_v48, 1  ;;  %v677_v53 = vrot.slane %v1218_v50, 1  ;;  %v537_v55 = vshrl.u32 %v1216_v39, 16 }
  0x1a   : > { %1095 = vmatprep.mubr.msk.bf16.mxu0 %vm1246_vm0, %v1245_v1  ;;  %1121 = vmatprep.mubr.msk.bf16.mxu1 %vm1246_vm0, %v1245_v1  ;;  %v299_v36 = vsel %vm263_vm2, %v294_v31, %v298_v32  ;;  %v302_v45 = vor.u32 %v300_v41, %v298_v32  ;;  %v676_v49 = vsel %vm673_vm3, %v674_v43, %v675_v44  ;;  %v541_v56 = vshll.u32 %v1218_v50, 16 }
  0x1b   : > { %v531_v51 = vor.u32 %v530_v47, %v526_v46  ;;  %v678_v57 = vsel %vm673_vm3, %v675_v44, %v677_v53  ;;  %v539_v59 = vor.u32 %v537_v55, %v535_v52  ;;  %v679_v61 = vrot.slane %v1219_v58, 1 }
  0x1c   : > { %v543_v60 = vrot.slane %v541_v56, 1  ;;  %v545_v63 = vshrl.u32 %v1218_v50, 16  ;;  %v549_v0 = vshll.u32 %v1219_v58, 16  ;;  %v681_v6 = vrot.slane %v1220_v3, 1 }
  0x1d   : > { %v536_v54 = vsel %vm263_vm2, %v531_v51, %v535_v52  ;;  %v680_v2 = vsel %vm673_vm3, %v677_v53, %v679_v61  ;;  %v553_v8 = vshrl.u32 %v1219_v58, 16  ;;  %v561_v14 = vshrl.u32 %v1220_v3, 16 }
  0x1e   : > { %v544_v62 = vsel %vm263_vm2, %v539_v59, %v543_v60  ;;  %v547_v4 = vor.u32 %v545_v63, %v543_v60  ;;  %v551_v5 = vrot.slane %v549_v0, 1  ;;  %v682_v10 = vsel %vm673_vm3, %v679_v61, %v681_v6  ;;  %v1415_v63 = vld [vmem:[%s1457_s2] ss:$0 sm:$0xff] }
  0x20   : > { %1096 = vmatmul.mubr.msk.bf16.gmra.mxu0 %vm309_vm1, %v283_v20  ;;  %v552_v7 = vsel %vm263_vm2, %v547_v4, %v551_v5  ;;  %v555_v11 = vor.u32 %v553_v8, %v551_v5 }
  0x21   : > { %1122 = vmatmul.mubr.msk.bf16.gmra.mxu1 %vm309_vm1, %v1211_v9  ;;  %1099 = vmatprep.mubr.msk.bf16.mxu0 %vm1246_vm0, %v1245_v1  ;;  %v557_v9 = vshll.u32 %v1220_v3, 16 }
  0x22   : > { %1125 = vmatprep.mubr.msk.bf16.mxu1 %vm1246_vm0, %v1245_v1 }
  0x23   : > { %v559_v12 = vrot.slane %v557_v9, 1 }
  0x25   : > { %v560_v13 = vsel %vm263_vm2, %v555_v11, %v559_v12  ;;  %v563_v15 = vor.u32 %v561_v14, %v559_v12 }
  0x28   : > { %1100 = vmatmul.mubr.msk.bf16.gmra.mxu0 %vm309_vm1, %v291_v28 }
  0x29   : > { %1126 = vmatmul.mubr.msk.bf16.gmra.mxu1 %vm309_vm1, %v1212_v19  ;;  %1103 = vmatprep.mubr.msk.bf16.mxu0 %vm1246_vm0, %v1245_v1 }
  0x2a   : > { %1129 = vmatprep.mubr.msk.bf16.mxu1 %vm1246_vm0, %v1245_v1 }
  0x30   : > { %1104 = vmatmul.mubr.msk.bf16.gmra.mxu0 %vm309_vm1, %v299_v36 }
  0x31   : > { %1130 = vmatmul.mubr.msk.bf16.gmra.mxu1 %vm309_vm1, %v992_v37  ;;  %1107 = vmatprep.mubr.msk.bf16.mxu0 %vm1246_vm0, %v1245_v1 }
  0x32   : > { %1157 = vmatprep.mubr.msk.bf16.mxu1 %vm1246_vm0, %v1245_v1 }
  0x38   : > { %1108 = vmatmul.mubr.msk.bf16.gmra.mxu0 %vm309_vm1, %v302_v45 }
  0x39   : > { %1158 = vmatmul.mubr.msk.bf16.vlgmr.msra.gmra.mxu1 %vm309_vm1, %v676_v49  ;;  %1135 = vmatprep.mubr.msk.bf16.mxu0 %vm1246_vm0, %v1245_v1 }
  0x3a   : > { %1161 = vmatprep.mubr.msk.bf16.mxu1 %vm1246_vm0, %v1245_v1 }
  0x40   : > { %1136 = vmatmul.mubr.msk.bf16.vlgmr.msra.gmra.mxu0 %vm309_vm1, %v536_v54 }
  0x41   : > { %1162 = vmatmul.mubr.msk.bf16.gmra.mxu1 %vm309_vm1, %v678_v57  ;;  %1139 = vmatprep.mubr.msk.bf16.mxu0 %vm1246_vm0, %v1245_v1 }
  0x42   : > { %1165 = vmatprep.mubr.msk.bf16.mxu1 %vm1246_vm0, %v1245_v1 }
  0x48   : > { %1140 = vmatmul.mubr.msk.bf16.gmra.mxu0 %vm309_vm1, %v544_v62 }
  0x49   : > { %1166 = vmatmul.mubr.msk.bf16.gmra.mxu1 %vm309_vm1, %v680_v2  ;;  %1143 = vmatprep.mubr.msk.bf16.mxu0 %vm1246_vm0, %v1245_v1 }
  0x4a   : > { %1169 = vmatprep.mubr.msk.bf16.mxu1 %vm1246_vm0, %v1245_v1 }
  0x50   : > { %1144 = vmatmul.mubr.msk.bf16.gmra.mxu0 %vm309_vm1, %v552_v7 }
  0x51   : > { %1170 = vmatmul.mubr.msk.bf16.gmra.mxu1 %vm309_vm1, %v682_v10  ;;  %1147 = vmatprep.mubr.msk.bf16.mxu0 %vm1246_vm0, %v1245_v1 }
  0x52   : > { %1173 = vmatprep.mubr.msk.bf16.mxu1 %vm1246_vm0, %v1245_v1 }
  0x58   : > { %1148 = vmatmul.mubr.msk.bf16.gmra.mxu0 %vm309_vm1, %v560_v13 }
  0x59   : > { %1174 = vmatmul.mubr.msk.bf16.gmra.mxu1 %vm309_vm1, %v681_v6  ;;  %1151 = vmatprep.mubr.msk.bf16.mxu0 %vm1246_vm0, %v1245_v1 }
  0x60   : > { %1152 = vmatmul.mubr.msk.bf16.gmra.mxu0 %vm309_vm1, %v563_v15 }
  0xd1   : > { %v449_v16 = vpop.f32.mrf.mxu1 }
  0xd3   : > { %v1115_v17 = vpop.f32.mrf.mxu1 }
  0xd5   : > { %v452_v18 = vpop.f32.mrf.mxu1 }
  0xd7   : > { %v1116_v19 = vpop.f32.mrf.mxu1 }
  0xd8   : > { %v359_v20 = vpop.f32.mrf.mxu0 }
  0xd9   : > { %v457_v21 = vpop.f32.mrf.mxu1  ;;  %v450_v58 = vadd.f32 %v449_v16, %v359_v20 }
  0xda   : > { %v1093_v22 = vpop.f32.mrf.mxu0 }
  0xdb   : > { %v1119_v23 = vpop.f32.mrf.mxu1 }
  0xdc   : > { %v362_v24 = vpop.f32.mrf.mxu0 }
  0xdd   : > { %v460_v25 = vpop.f32.mrf.mxu1  ;;  %v453_v2 = vadd.f32 %v452_v18, %v362_v24 }
  0xde   : > { %v1094_v26 = vpop.f32.mrf.mxu0 }
  0xdf   : > { %v1120_v27 = vpop.f32.mrf.mxu1 }
  0xe0   : > { %v367_v28 = vpop.f32.mrf.mxu0 }
  0xe1   : > { %v1394_v29 = vpop.f32.mrf.mxu1  ;;  %v458_v10 = vadd.f32 %v457_v21, %v367_v28 }
  0xe2   : > { %v1097_v30 = vpop.f32.mrf.mxu0 }
  0xe3   : > { %v1123_v1 = vpop.f32.mrf.mxu1 }
  0xe4   : > { %v370_v31 = vpop.f32.mrf.mxu0 }
  0xe5   : > { %v1396_v32 = vpop.f32.mrf.mxu1  ;;  %v461_v19 = vadd.f32 %v460_v25, %v370_v31 }
  0xe6   : > { %v1098_v33 = vpop.f32.mrf.mxu0 }
  0xe7   : > { %v1124_v34 = vpop.f32.mrf.mxu1 }
  0xe8   : > { %v375_v35 = vpop.f32.mrf.mxu0 }
  0xe9   : > { %v1398_v36 = vpop.f32.mrf.mxu1  ;;  %v466_v33 = vadd.f32 %v1394_v29, %v375_v35 }
  0xea   : > { %v1101_v37 = vpop.f32.mrf.mxu0 }
  0xeb   : > { %v1127_v38 = vpop.f32.mrf.mxu1 }
  0xec   : > { %v1400_v39 = vpop.f32.mrf.mxu0 }
  0xed   : > { %v1402_v40 = vpop.f32.mrf.mxu1 }
  0xee   : > { %v1102_v41 = vpop.f32.mrf.mxu0 }
  0xef   : > { %v1128_v42 = vpop.f32.mrf.mxu1 }
  0xf0   : > { %v1404_v43 = vpop.f32.mrf.mxu0 }
  0xf1   : > { %v1406_v44 = vpop.f32.mrf.mxu1 }
  0xf2   : > { %v1105_v45 = vpop.f32.mrf.mxu0 }
  0xf3   : > { %v1131_v46 = vpop.f32.mrf.mxu1 }
  0xf4   : > { %v1408_v47 = vpop.f32.mrf.mxu0 }
  0xf5   : > { %v484_v48 = vpop.f32.mrf.mxu1 }
  0xf6   : > { %v1106_v49 = vpop.f32.mrf.mxu0  ;;  %v469_v48 = vadd.f32 %v1396_v32, %v1400_v39 }
  0xf7   : > { %v1132_v50 = vpop.f32.mrf.mxu1 }
  0xf8   : > { %v1410_v51 = vpop.f32.mrf.mxu0 }
  0xf9   : > { %v738_v52 = vpop.f32.mrf.mxu1 }
  0xfa   : > { %v1109_v53 = vpop.f32.mrf.mxu0 }
  0xfb   : > { %v1159_v54 = vpop.f32.mrf.mxu1 }
  0xfc   : > { %v394_v55 = vpop.f32.mrf.mxu0 }
  0xfd   : > { %v741_v56 = vpop.f32.mrf.mxu1 }
  0xfe   : > { %v1110_v57 = vpop.f32.mrf.mxu0 }
  0xff   : > { %v1160_v59 = vpop.f32.mrf.mxu1 }
 0x100   : > { %v619_v60 = vpop.f32.mrf.mxu0 }
 0x101   : > { %v657_v61 = vadd.f32 %v619_v60, %v450_v58  ;;  %v746_v62 = vpop.f32.mrf.mxu1  ;;  %v474_v58 = vadd.f32 %v1398_v36, %v1404_v43 }
 0x102   : > { %v1137_v0 = vpop.f32.mrf.mxu0 }
 0x103   : > { %v776_v3 = vadd.f32 %v738_v52, %v657_v61  ;;  %v1163_v4 = vpop.f32.mrf.mxu1 }
 0x104   : > { %v622_v5 = vpop.f32.mrf.mxu0  ;;  %v477_v4 = vadd.f32 %v1402_v40, %v1408_v47 }
 0x105   : > { %v792_v6 = vadd.f32 %v1415_v63, %v776_v3  ;;  %v658_v7 = vadd.f32 %v622_v5, %v453_v2  ;;  %v749_v8 = vpop.f32.mrf.mxu1 }
 0x106   : > { %v1138_v9 = vpop.f32.mrf.mxu0 }
 0x107   : > { %v777_v11 = vadd.f32 %v741_v56, %v658_v7  ;;  %v1164_v12 = vpop.f32.mrf.mxu1  ;;  %v801_v14 = vmul.f32 0.2, %v792_v6 }
 0x108   : > { %v627_v13 = vpop.f32.mrf.mxu0 }
 0x109   : > { %v793_v15 = vadd.f32 %v1415_v63, %v777_v11  ;;  %v659_v16 = vadd.f32 %v627_v13, %v458_v10  ;;  %v754_v17 = vpop.f32.mrf.mxu1  ;;  %v810_v26 = vmax.f32 %v792_v6, %v801_v14  ;;  %v482_v13 = vadd.f32 %v1406_v44, %v1410_v51 }
 0x10a   : > { %v1141_v18 = vpop.f32.mrf.mxu0 }
 0x10b   : > { %v802_v20 = vmul.f32 0.2, %v793_v15  ;;  %v778_v22 = vadd.f32 %v746_v62, %v659_v16  ;;  %v1167_v23 = vpop.f32.mrf.mxu1 }
 0x10c   : > { %v630_v24 = vpop.f32.mrf.mxu0 }
 0x10d   : > { %v811_v27 = vmax.f32 %v793_v15, %v802_v20  ;;  %v794_v30 = vadd.f32 %v1415_v63, %v778_v22  ;;  %v660_v21 = vadd.f32 %v630_v24, %v461_v19  ;;  %v757_v28 = vpop.f32.mrf.mxu1 }
 0x10e   : > { %v1142_v1 = vpop.f32.mrf.mxu0 }
 0x10f   : > { %v1045_v25 = vpack.c.bf16 %v811_v27, %v810_v26  ;;  %v779_v31 = vadd.f32 %v749_v8, %v660_v21  ;;  %v1168_v34 = vpop.f32.mrf.mxu1  ;;  %v803_v38 = vmul.f32 0.2, %v794_v30 }
 0x110   : > { %v635_v37 = vpop.f32.mrf.mxu0 }
 0x111   : > { %1046 = vst [vmem:[%s1424_s6] sm:$0xff] %v1045_v25   ;;  %v795_v41 = vadd.f32 %v1415_v63, %v779_v31  ;;  %v661_v42 = vadd.f32 %v635_v37, %v466_v33  ;;  %v762_v45 = vpop.f32.mrf.mxu1  ;;  %v812_v29 = vmax.f32 %v794_v30, %v803_v38 }
 0x112   : > { %v1145_v46 = vpop.f32.mrf.mxu0 }
 0x113   : > { %v804_v49 = vmul.f32 0.2, %v795_v41  ;;  %v780_v50 = vadd.f32 %v754_v17, %v661_v42  ;;  %v1171_v52 = vpop.f32.mrf.mxu1 }
 0x114   : > { %v638_v53 = vpop.f32.mrf.mxu0 }
 0x115   : > { %v813_v35 = vmax.f32 %v795_v41, %v804_v49  ;;  %v796_v54 = vadd.f32 %v1415_v63, %v780_v50  ;;  %v662_v55 = vadd.f32 %v638_v53, %v469_v48  ;;  %v765_v56 = vpop.f32.mrf.mxu1 }
 0x116   : > { %v1146_v57 = vpop.f32.mrf.mxu0 }
 0x117   : > { %v1050_v59 = vpack.c.bf16 %v813_v35, %v812_v29  ;;  %v781_v60 = vadd.f32 %v757_v28, %v662_v55  ;;  %v1172_v61 = vpop.f32.mrf.mxu1  ;;  %v805_v32 = vmul.f32 0.2, %v796_v54 }
 0x118   : > { %v643_v62 = vpop.f32.mrf.mxu0 }
 0x119   : > { %1062 = vst [vmem:[%s1424_s6 + $0x8] sm:$0xff] %v1050_v59   ;;  %v797_v39 = vadd.f32 %v1415_v63, %v781_v60  ;;  %v663_v0 = vadd.f32 %v643_v62, %v474_v58  ;;  %v770_v2 = vpop.f32.mrf.mxu1  ;;  %v814_v36 = vmax.f32 %v796_v54, %v805_v32 }
 0x11a   : > { %v1149_v3 = vpop.f32.mrf.mxu0 }
 0x11b   : > { %v806_v5 = vmul.f32 0.2, %v797_v39  ;;  %v782_v6 = vadd.f32 %v762_v45, %v663_v0  ;;  %v1175_v7 = vpop.f32.mrf.mxu1 }
 0x11c   : > { %v646_v8 = vpop.f32.mrf.mxu0 }
 0x11d   : > { %v815_v43 = vmax.f32 %v797_v39, %v806_v5  ;;  %v798_v9 = vadd.f32 %v1415_v63, %v782_v6  ;;  %v664_v10 = vadd.f32 %v646_v8, %v477_v4  ;;  %v773_v11 = vpop.f32.mrf.mxu1 }
 0x11e   : > { %v1150_v12 = vpop.f32.mrf.mxu0 }
 0x11f   : > { %v1055_v14 = vpack.c.bf16 %v815_v43, %v814_v36  ;;  %v783_v15 = vadd.f32 %v765_v56, %v664_v10  ;;  %v1176_v16 = vpop.f32.mrf.mxu1  ;;  %v807_v47 = vmul.f32 0.2, %v798_v9 }
 0x120   : > { %v651_v40 = vpop.f32.mrf.mxu0 }
 0x121   : > { %1063 = vst [vmem:[%s1424_s6 + $0x10] sm:$0xff] %v1055_v14   ;;  %v799_v17 = vadd.f32 %v1415_v63, %v783_v15  ;;  %v665_v18 = vadd.f32 %v651_v40, %v482_v13  ;;  %v816_v24 = vmax.f32 %v798_v9, %v807_v47 }
 0x122   : > { %v1153_v19 = vpop.f32.mrf.mxu0 }
 0x123   : > { %v808_v20 = vmul.f32 0.2, %v799_v17  ;;  %v784_v22 = vadd.f32 %v770_v2, %v665_v18 }
 0x124   : > { %v654_v23 = vpop.f32.mrf.mxu0 }
 0x125   : > { %v817_v26 = vmax.f32 %v799_v17, %v808_v20  ;;  %v800_v27 = vadd.f32 %v1415_v63, %v784_v22 }
 0x126   : > { %v1154_v44 = vpop.f32.mrf.mxu0 }
 0x127   : > { %v1060_v51 = vpack.c.bf16 %v817_v26, %v816_v24  ;;  %v809_v30 = vmul.f32 0.2, %v800_v27 }
 0x129   : > { %1064 = vst [vmem:[%s1424_s6 + $0x18] sm:$0xff] %v1060_v51   ;;  %v818_v21 = vmax.f32 %v800_v27, %v809_v30 }
 0x12b   : > { %v1041_v28 = vpack.c.bf16 %v818_v21, %v818_v21 }
 0x12d   : > { %864 = vst [vmem:[%s1424_s6 + $0x20] sm:$0xf] %v1041_v28 }
 0x12e PF: > { %s13_s14 = sadd.s32 1, %s1243_s14   ;;  %s1459_s12 = smov %s1239_s13 }
 0x12f   : > { %p10_p5 = scmp.ge.s32.totalorder %s13_s14, 4   ;;  %s1460_s13 = smov %s1462_s15 }
 0x131   :  { %12 = sbr.rel (!%p10_p5) target bundleno = 2 (0x2), region = 71 }

// kernel: encoder_forward.3
= control target key start
LH: loop header
LB: loop body
LE: loop exit
PB: predicated region body
PF: predicated region fallthrough
CT: control target
= control target key end

     0   :  { %s886_s12 = smov 0   ;;  %s888_s13 = smov 0   ;;  %s960_s0 = inlined_call_operand.vmem [shape: bf16[2,32,32], index: 0, kind: input, shape index: {}]   ;;  %s961_s1 = inlined_call_operand.vmem [shape: bf16[4,32,128], index: 1, kind: input, shape index: {}]   ;;  %s962_s2 = inlined_call_operand.vmem [shape: f32[1,128], index: 2, kind: input, shape index: {}]   ;;  %s963_s3 = inlined_call_operand.vmem [shape: f32[2,20,128], index: 3, kind: output, shape index: {}]  }
   0x1   :  { %s890_s14 = smov 0  }
   0x2 LB: > { %s25_s15 = sadd.s32 1, %s860_s13  ;;  %p713_p0 = scmp.ge.s32.totalorder %s864_s14, 1  ;;  %s864_s14 = sphi %s890_s14, %s13_s14   ;;  %s860_s13 = sphi %s888_s13, %s965_s13   ;;  %s856_s12 = sphi %s886_s12, %s964_s12  }
   0x3   : > { %p27_p1 = scmp.ge.s32.totalorder %s25_s15, 2  ;;  %p168_p2 = scmp.lt.s32.totalorder %s864_s14, 3 }
   0x5   : > { %s967_s15 = smov (%p27_p1, %s25_s15), 0  ;;  %p169_p3 = pnand %p713_p0, %p168_p2 }
   0x6   : > { %p202_p4 = scmp.lt.s32.totalorder (!%p169_p3), %s856_s12, 1 }
   0x7   : > { %172 = sbr.rel (%p169_p3) target bundleno = 242 (0xf2), region = 32 }
   0xc   : > { %v828_v0 = vld [vmem:[%s961_s1 + $0x8] sm:$0xff]   ;;  %v829_v1 = vld [vmem:[%s961_s1 + $0x18] sm:$0xff]   ;;  %v830_v2 = vld [vmem:[%s961_s1] sm:$0xff]   ;;  %s969_s12 = smov (!%p202_p4, %s856_s12), 1  ;;  %vm272_vm0 = vcmask 261120   ;;  %vm510_vm2 = vcmask 1044480  }
   0xd   : > { %779 = vmatprep.subr.bf16.mxu1 %v828_v0  ;;  %771 = vmatprep.subr.bf16.mxu0 %v829_v1  ;;  %v831_v3 = vld [vmem:[%s961_s1 + $0x10] sm:$0xff]   ;;  %s754_s24 = sshll.u32 %s969_s12, 4  ;;  %v834_v4 = vld [vmem:[%s961_s1 + $0x38] sm:$0xff]   ;;  %vm244_vm1 = vsmask.f32 7424  ;;  %v836_v7 = vld [vmem:[%s961_s1 + $0x28] sm:$0xff]  }
   0xe   : > { %780 = vmatpush3.bf16.msra.mxu1 %v828_v0  ;;  %772 = vmatpush3.bf16.msra.mxu0 %v829_v1  ;;  %s206_s29 = scalar_lea.vmem %s960_s0, %s754_s24  ;;  %v837_v11 = vld [vmem:[%s961_s1 + $0x30] sm:$0xff]   ;;  %v838_v27 = vld [vmem:[%s961_s1 + $0x20] sm:$0xff]   ;;  %vm414_vm3 = vsmask.f32 5376  ;;  %s803_s11 = smul.u32 24, %s969_s12 }
   0xf   : > { %781 = vmatprep.subr.bf16.mxu1 %v830_v2  ;;  %773 = vmatprep.subr.bf16.mxu0 %v831_v3  ;;  %v832_v5 = vld [vmem:[%s206_s29] sm:$0xff]   ;;  %v833_v6 = vld [vmem:[%s206_s29 + $0x8] ss:$0 sps:$4 sm:$0x33]  }
  0x10   : > { %783 = vmatprep.mubr.msk.bf16.mxu1 %vm272_vm0, %v832_v5  ;;  %v835_v8 = vld [vmem:[%s206_s29 + $0x8] ss:$0 sps:$4 sm:$0x77]   ;;  %v246_v9 = vshrl.u32 %v832_v5, 16  ;;  %v248_v10 = vshll.u32 %v832_v5, 16  ;;  %s221_s18 = scalar_lea.vmem %s963_s3, %s803_s11 }
  0x11   : > { %v253_v12 = vshll.u32 %v835_v8, 16  ;;  %v257_v13 = vshrl.u32 %v835_v8, 16  ;;  %v395_v15 = vld [vmem:[%s206_s29] sm:$0xc]  ;;  %v396_v16 = vld [vmem:[%s206_s29 + $0x4] sm:$0xf] }
  0x12   : > { %782 = vmatpush3.bf16.msra.mxu1 %v830_v2  ;;  %774 = vmatpush3.bf16.msra.mxu0 %v831_v3  ;;  %v250_v14 = vrot.slane %v248_v10, 1  ;;  %v736_v18 = vcombine.low %v395_v15, %v396_v16  ;;  %v840_v20 = vld [vmem:[%s206_s29 + $0x8] sm:$0x1f]   ;;  %v501_v21 = vld [vmem:[%s206_s29] sm:$0x8] }
  0x13   : > { %795 = vmatprep.subr.bf16.mxu1 %v834_v4  ;;  %787 = vmatprep.subr.bf16.mxu0 %v836_v7  ;;  %v255_v17 = vrot.slane %v253_v12, 1  ;;  %v746_v23 = vcombine.low %v501_v21, %v396_v16  ;;  %v512_v28 = vrot.slane %v840_v20, 3  ;;  %v424_v29 = vshrl.u32 %v840_v20, 16  ;;  %v751_v55 = vld [vmem:[%s962_s2] ss:$0 sm:$0xff] }
  0x14   : > { %v251_v19 = vor.u32 %v250_v14, %v246_v9  ;;  %v416_v24 = vshrl.u32 %v736_v18, 16  ;;  %v419_v25 = vshll.u32 %v736_v18, 16  ;;  %v427_v30 = vshll.u32 %v840_v20, 16 }
  0x15   : > { %784 = vmatmul.mubr.msk.bf16.vlgmr.msra.gmra.mxu1 %vm272_vm0, %v833_v6  ;;  %v259_v22 = vor.u32 %v257_v13, %v255_v17  ;;  %v511_v31 = vrot.slane %v746_v23, 3  ;;  %v426_v34 = vrot.slane %v424_v29, 2 }
  0x16   : > { %796 = vmatpush3.bf16.msra.mxu1 %v834_v4  ;;  %v256_v26 = vsel %vm244_vm1, %v251_v19, %v255_v17  ;;  %v418_v32 = vrot.slane %v416_v24, 2  ;;  %v421_v33 = vrot.slane %v419_v25, 3  ;;  %v429_v35 = vrot.slane %v427_v30, 3 }
  0x17   : > { %797 = vmatprep.subr.bf16.mxu1 %v837_v11  ;;  %775 = vmatprep.mubr.msk.bf16.mxu0 %vm272_vm0, %v256_v26  ;;  %v513_v36 = vsel %vm510_vm2, %v511_v31, %v512_v28 }
  0x18   : > { %776 = vmatmul.mubr.msk.bf16.vlgmr.msra.gmra.mxu0 %vm272_vm0, %v259_v22  ;;  %v422_v37 = vor.u32 %v421_v33, %v418_v32  ;;  %799 = vmatprep.mubr.msk.bf16.mxu1 %vm272_vm0, %v513_v36  ;;  %v430_v38 = vor.u32 %v429_v35, %v426_v34 }
  0x19   : > { %788 = vmatpush3.bf16.msra.mxu0 %v836_v7 }
  0x1a   : > { %798 = vmatpush3.bf16.msra.mxu1 %v837_v11  ;;  %789 = vmatprep.subr.bf16.mxu0 %v838_v27  ;;  %v431_v39 = vsel %vm414_vm3, %v422_v37, %v430_v38 }
  0x1b   : > { %791 = vmatprep.mubr.msk.bf16.mxu0 %vm272_vm0, %v431_v39 }
  0x1d   : > { %800 = vmatmul.mubr.msk.bf16.vlgmr.msra.gmra.mxu1 %vm272_vm0, %v512_v28  ;;  %790 = vmatpush3.bf16.msra.mxu0 %v838_v27 }
  0x20   : > { %792 = vmatmul.mubr.msk.bf16.vlgmr.msra.gmra.mxu0 %vm272_vm0, %v430_v38 }
  0xd5   : > { %v785_v40 = vpop.f32.mrf.mxu1 }
  0xd7   : > { %v381_v41 = vpop.f32.mrf.mxu1 }
  0xd8   : > { %v777_v44 = vpop.f32.mrf.mxu0 }
  0xd9   : > { %v786_v42 = vpop.f32.mrf.mxu1  ;;  %v390_v50 = vadd.f32 %v785_v40, %v777_v44 }
  0xda   : > { %v313_v45 = vpop.f32.mrf.mxu0 }
  0xdb   : > { %v384_v43 = vpop.f32.mrf.mxu1  ;;  %v382_v53 = vadd.f32 %v381_v41, %v313_v45 }
  0xdc   : > { %v778_v47 = vpop.f32.mrf.mxu0 }
  0xdd   : > { %v801_v46 = vpop.f32.mrf.mxu1 }
  0xde   : > { %v316_v49 = vpop.f32.mrf.mxu0 }
  0xdf   : > { %v566_v48 = vpop.f32.mrf.mxu1  ;;  %v385_v60 = vadd.f32 %v384_v43, %v316_v49 }
  0xe0   : > { %v793_v52 = vpop.f32.mrf.mxu0 }
  0xe1   : > { %v802_v51 = vpop.f32.mrf.mxu1  ;;  %v500_v54 = vadd.f32 %v793_v52, %v390_v50 }
  0xe2   : > { %v484_v56 = vpop.f32.mrf.mxu0 }
  0xe3   : > { %v582_v57 = vadd.f32 %v801_v46, %v500_v54  ;;  %v498_v58 = vadd.f32 %v484_v56, %v382_v53  ;;  %v569_v3 = vpop.f32.mrf.mxu1 }
  0xe4   : > { %v794_v59 = vpop.f32.mrf.mxu0 }
  0xe5   : > { %v592_v61 = vadd.f32 %v751_v55, %v582_v57  ;;  %v580_v62 = vadd.f32 %v566_v48, %v498_v58 }
  0xe6   : > { %v487_v63 = vpop.f32.mrf.mxu0 }
  0xe7   : > { %v595_v0 = vmul.f32 0.2, %v592_v61  ;;  %v590_v1 = vadd.f32 %v751_v55, %v580_v62  ;;  %v499_v2 = vadd.f32 %v487_v63, %v385_v60 }
  0xe9   : > { %v598_v4 = vmax.f32 %v592_v61, %v595_v0  ;;  %v593_v5 = vmul.f32 0.2, %v590_v1  ;;  %v581_v6 = vadd.f32 %v569_v3, %v499_v2 }
  0xeb   : > { %601 = vst [vmem:[%s221_s18 + $0x10] sm:$0xf] %v598_v4  ;;  %v596_v7 = vmax.f32 %v590_v1, %v593_v5  ;;  %v591_v8 = vadd.f32 %v751_v55, %v581_v6 }
  0xed   : > { %599 = vst [vmem:[%s221_s18] sm:$0xff] %v596_v7  ;;  %v594_v9 = vmul.f32 0.2, %v591_v8 }
  0xef   : > { %v597_v10 = vmax.f32 %v591_v8, %v594_v9 }
  0xf1   : > { %600 = vst [vmem:[%s221_s18 + $0x8] sm:$0xff] %v597_v10 }
  0xf2 PF: > { %s13_s14 = sadd.s32 1, %s864_s14   ;;  %s964_s12 = smov %s860_s13 }
  0xf3   : > { %p10_p5 = scmp.ge.s32.totalorder %s13_s14, 4   ;;  %s965_s13 = smov %s967_s15 }
  0xf5   :  { %12 = sbr.rel (!%p10_p5) target bundleno = 2 (0x2), region = 71 }

</bundles_post_ra>
